<compile_context>
chip_gen: v6e
topology: v6e:2x2x1
jax: 0.10.0
libtpu: 0.0.40
codegen_flags: <defaults>
</compile_context>

<pallas_src>
import functools

import jax
import jax.numpy as jnp
from jax.experimental import pallas as pl
from jax.experimental.pallas import tpu as pltpu

_LANES = 128


def _mask_kernel(seed_ref, x_ref, o_ref, *, mask_percent):
    tr, lanes = x_ref.shape

    # Global linear element index of every element of this tile.
    row_base = pl.program_id(0) * tr
    r = jax.lax.broadcasted_iota(jnp.int32, (tr, lanes), 0)
    c = jax.lax.broadcasted_iota(jnp.int32, (tr, lanes), 1)
    lin = ((row_base + r) * lanes + c).astype(jnp.uint32)

    # Counter-based hash PRNG: mix the seed in, then murmur3 fmix32 avalanche.
    seed = seed_ref[0].astype(jnp.uint32)
    h = lin ^ (seed * jnp.uint32(0x9E3779B9))
    h = h ^ (h >> 16)
    h = h * jnp.uint32(0x85EBCA6B)
    h = h ^ (h >> 13)
    h = h * jnp.uint32(0xC2B2AE35)
    h = h ^ (h >> 16)

    # P(keep) = P(u > mask_percent) = 1 - mask_percent, matching torch.rand > p.
    thr = jnp.uint32(min(int(float(mask_percent) * 2.0**32), 2**32 - 1))
    keep = h > thr
    o_ref[...] = jnp.where(keep, x_ref[...], jnp.zeros((), dtype=o_ref.dtype))


def mask_layer(x, *, training=False, mask_percent=0.15, seed=0):
    """Pallas implementation of MaskLayer.forward."""
    if not training:
        return x  # identity path, matches the PyTorch module exactly

    orig_shape = x.shape
    total = x.size

    # Flatten to a lane-dense 2D slab (last dim = 128 lanes).  Reshape of a
    # contiguous array is free; pad only if element count is not a multiple
    # of 128 (rare tail case).
    x_flat = jnp.ravel(x)
    rem = total % _LANES
    if rem:
        x_flat = jnp.pad(x_flat, (0, _LANES - rem))
    rows = x_flat.size // _LANES
    x2d = x_flat.reshape(rows, _LANES)

    # 1024x128 f32 = 512 KiB per buffer; double-buffered in+out ~= 2 MiB.
    TR = 1024 if rows >= 1024 else rows
    grid = (pl.cdiv(rows, TR),)

    seed_arr = jnp.asarray([seed], dtype=jnp.int32)

    out2d = pl.pallas_call(
        functools.partial(_mask_kernel, mask_percent=float(mask_percent)),
        out_shape=jax.ShapeDtypeStruct(x2d.shape, x2d.dtype),
        grid=grid,
        in_specs=[
            pl.BlockSpec(memory_space=pltpu.MemorySpace.SMEM),  # seed scalar
            pl.BlockSpec((TR, _LANES), lambda i: (i, 0)),       # data tile
        ],
        out_specs=pl.BlockSpec((TR, _LANES), lambda i: (i, 0)),
        compiler_params=pltpu.CompilerParams(
            dimension_semantics=("parallel",)),
        cost_estimate=pl.CostEstimate(
            flops=12 * total,
            transcendentals=0,
            bytes_accessed=2 * total * x.dtype.itemsize),
    )(seed_arr, x2d)

    if rem:
        out2d = out2d.reshape(-1)[:total]
    return out2d.reshape(orig_shape)


if __name__ == "__main__":
    key = jax.random.PRNGKey(0)
    # Small NCHW-shaped input consistent with typical conv-pipeline usage.
    x = jax.random.normal(key, (2, 4, 16, 16), dtype=jnp.float32)

    # Eval path: identity (no kernel launch).
    y_eval = mask_layer(x, training=False)
    jax.block_until_ready(y_eval)
    assert jnp.allclose(y_eval, x), "eval path must be identity"

    # Training path: random masking inside the Pallas kernel.
    y_train = mask_layer(x, training=True, mask_percent=0.15, seed=1234)
    jax.block_until_ready(y_train)

    # Each output element is either 0 (masked) or equals the input (kept).
    kept = jnp.isclose(y_train, x)
    zeroed = y_train == 0.0
    assert bool(jnp.all(kept | zeroed)), "outputs must be x or 0"
    # Roughly mask_percent of elements should be zeroed (loose sanity bound).
    frac_zero = float(jnp.mean(jnp.logical_not(kept).astype(jnp.float32)))
    assert 0.0 < frac_zero < 0.5, f"unexpected mask fraction {frac_zero}"

    print("KERNEL_OK")
</pallas_src>

<mosaic_0001>
module attributes {stable_mosaic.version = 11 : i64} {
  func.func @_mask_kernel(%arg0: i32, %arg1: memref<1xi32, #tpu.memory_space<smem>>, %arg2: memref<16x128xf32, #tpu.memory_space<vmem>>, %arg3: memref<16x128xf32, #tpu.memory_space<vmem>>) attributes {dimension_semantics = [#tpu.dimension_semantics<parallel>], iteration_bounds = array<i64: 1>, scalar_prefetch = 0 : i64, scratch_operands = 0 : i64, tpu.core_type = #tpu.core_type<tc>, window_params = [{transform_indices = @transform_0, window_bounds = array<i64: 1>}, {transform_indices = @transform_1, window_bounds = array<i64: 16, 128>}, {transform_indices = @transform_2, window_bounds = array<i64: 16, 128>}]} {
    %c16_i32 = arith.constant 16 : i32
    %0 = arith.muli %arg0, %c16_i32 : i32
    %1 = tpu.iota {dimensions = array<i32: 0>} : vector<16x128xi32>
    %2 = tpu.iota {dimensions = array<i32: 1>} : vector<16x128xi32>
    %3 = vector.broadcast %0 : i32 to vector<16x128xi32>
    %4 = arith.addi %3, %1 : vector<16x128xi32>
    %c128_i32 = arith.constant 128 : i32
    %5 = vector.broadcast %c128_i32 : i32 to vector<16x128xi32>
    %6 = arith.muli %4, %5 : vector<16x128xi32>
    %7 = arith.addi %6, %2 : vector<16x128xi32>
    %c0 = arith.constant 0 : index
    %8 = memref.load %arg1[%c0] : memref<1xi32, #tpu.memory_space<smem>>
    %c-1640531527_i32 = arith.constant -1640531527 : i32
    %9 = arith.muli %8, %c-1640531527_i32 : i32
    %10 = vector.broadcast %9 : i32 to vector<16x128xi32>
    %11 = arith.xori %7, %10 : vector<16x128xi32>
    %c16_i32_0 = arith.constant 16 : i32
    %12 = vector.broadcast %c16_i32_0 : i32 to vector<16x128xi32>
    %13 = arith.shrui %11, %12 : vector<16x128xi32>
    %14 = arith.xori %11, %13 : vector<16x128xi32>
    %c-2048144789_i32 = arith.constant -2048144789 : i32
    %15 = vector.broadcast %c-2048144789_i32 : i32 to vector<16x128xi32>
    %16 = arith.muli %14, %15 : vector<16x128xi32>
    %c13_i32 = arith.constant 13 : i32
    %17 = vector.broadcast %c13_i32 : i32 to vector<16x128xi32>
    %18 = arith.shrui %16, %17 : vector<16x128xi32>
    %19 = arith.xori %16, %18 : vector<16x128xi32>
    %c-1028477387_i32 = arith.constant -1028477387 : i32
    %20 = vector.broadcast %c-1028477387_i32 : i32 to vector<16x128xi32>
    %21 = arith.muli %19, %20 : vector<16x128xi32>
    %c16_i32_1 = arith.constant 16 : i32
    %22 = vector.broadcast %c16_i32_1 : i32 to vector<16x128xi32>
    %23 = arith.shrui %21, %22 : vector<16x128xi32>
    %24 = arith.xori %21, %23 : vector<16x128xi32>
    %c644245094_i32 = arith.constant 644245094 : i32
    %25 = vector.broadcast %c644245094_i32 : i32 to vector<16x128xi32>
    %26 = arith.cmpi ugt, %24, %25 : vector<16x128xi32>
    %c0_2 = arith.constant 0 : index
    %c0_3 = arith.constant 0 : index
    %27 = vector.load %arg2[%c0_2, %c0_3] : memref<16x128xf32, #tpu.memory_space<vmem>>, vector<16x128xf32>
    %cst = arith.constant 0.000000e+00 : f32
    %28 = vector.broadcast %cst : f32 to vector<16x128xf32>
    %29 = arith.select %26, %27, %28 : vector<16x128xi1>, vector<16x128xf32>
    %c0_4 = arith.constant 0 : index
    %c0_5 = arith.constant 0 : index
    %30 = vector.load %arg3[%c0_4, %c0_5] : memref<16x128xf32, #tpu.memory_space<vmem>>, vector<16x128xf32>
    tpu.vector_store %arg3[%c0_4, %c0_5], %29 {strides = array<i32>} : memref<16x128xf32, #tpu.memory_space<vmem>>, vector<16x128xf32>,
    return
  }
  func.func @transform_0(%arg0: i32) -> i32 {
    %c0_i32 = arith.constant 0 : i32
    %c0_i32_0 = arith.constant 0 : i32
    return %c0_i32 : i32
  }
  func.func @transform_1(%arg0: i32) -> (i32, i32) {
    %c0_i32 = arith.constant 0 : i32
    %c0_i32_0 = arith.constant 0 : i32
    return %arg0, %c0_i32 : i32, i32
  }
  func.func @transform_2(%arg0: i32) -> (i32, i32) {
    %c0_i32 = arith.constant 0 : i32
    %c0_i32_0 = arith.constant 0 : i32
    return %arg0, %c0_i32 : i32, i32
  }
}

</mosaic_0001>

<bundles_post_ra>
// kernel: tpu_custom_call.1
= control target key start
LH: loop header
LB: loop body
LE: loop exit
PB: predicated region body
PF: predicated region fallthrough
CT: control target
= control target key end

     0   :  { %8 = vsyncpa [#allocation4], 0  ;;  %s168_s0 = inlined_call_operand.<no memory space> [shape: s32[1], index: 0, kind: input, shape index: {}]   ;;  %s169_s1 = inlined_call_operand.hbm [shape: f32[16,128], index: 1, kind: input, shape index: {}]   ;;  %s170_s2 = inlined_call_operand.hbm [shape: f32[16,128], index: 2, kind: output, shape index: {}]  }
   0x1   :  { %9 = vsyncpa [#allocation5], 0  ;;  %s134_s9 = smov [#allocation3]  }
   0x2   :  { %s17_s10 = sshll.u32 %s134_s9, 4  ;;  %s18_s10 = int_to_ptr.vmem [resolvable:$true] %s17_s10 }
   0x3   :  { %s98_s11 = scalar_lea.vmem %s18_s10, 256  ;;  %p103_p1 = scmp.lt.s32.totalorder %s18_s10, %s18_s10 }
   0x4   :  { %p99_p0 = scmp.ne.s32.totalorder %s18_s10, %s98_s11  ;;  %p104_p2 = scmp.lt.s32.totalorder %s98_s11, %s98_s11 }
   0x6   :  { %p105_p3 = por %p104_p2, %p103_p1 }
   0x8   :  { %p106_p4 = pnand %p105_p3, %p99_p0 }
   0xa   :  { %109 = shalt.err (!%p106_p4)
}
   0xb   :  { %s135_s12 = smov 128   ;;  %s136_s13 = smov 8  }
   0xc   :  { %23 = dma.hbm_to_vmem [thread:$0]  %s169_s1, 256, %s18_s10, [#allocation4], %s135_s12, %s135_s12, %s136_s13  }
   0xd   :  { %130 = dma.done.wait [#allocation4], 256  }
   0xe   :  { %131 = vsyncadd [#allocation4], 4294967040  ;;  %v28_v0 = vlaneseq  ;;  %s41_s18 = smul.u32 2654435769, %s168_s0  ;;  %v63_v25 = vld [vmem:[#allocation3] sm:$0xff]  ;;  %s137_s0 = smov [#allocation6]  }
   0xf   :  { %s74_s1 = sshll.u32 %s137_s0, 4  ;;  %v64_v28 = vld [vmem:[#allocation3 + $0x8] sm:$0xff]  ;;  %s75_s1 = int_to_ptr.vmem [resolvable:$true] %s74_s1 }
  0x10   :  { %v29_v1 = vshrl.u32 %v28_v0, 7  ;;  %v32_v2 = vand.u32 127, %v28_v0  ;;  %v42_v5 = vstv %s41_s18  ;;  %s110_s19 = scalar_lea.vmem %s75_s1, 256  ;;  %p115_p6 = scmp.lt.s32.totalorder %s75_s1, %s75_s1 }
  0x11   :  { %p111_p5 = scmp.ne.s32.totalorder %s75_s1, %s110_s19  ;;  %p116_p7 = scmp.lt.s32.totalorder %s110_s19, %s110_s19 }
  0x12   :  { %v36_v3 = vmul.u32 128, %v29_v1  ;;  %v30_v4 = vadd.s32 8, %v29_v1 }
  0x13   :  { %p117_p8 = por %p116_p7, %p115_p6 }
  0x14   :  { %v38_v6 = vadd.s32 %v36_v3, %v32_v2  ;;  %v37_v7 = vmul.u32 128, %v30_v4 }
  0x15   :  { %p118_p9 = pnand %p117_p8, %p111_p5 }
  0x16   :  { %v43_v8 = vxor.u32 %v42_v5, %v38_v6  ;;  %v39_v9 = vadd.s32 %v37_v7, %v32_v2 }
  0x18   :  { %v45_v10 = vshrl.u32 %v43_v8, 16  ;;  %v44_v11 = vxor.u32 %v42_v5, %v39_v9 }
  0x1a   :  { %v47_v12 = vxor.u32 %v45_v10, %v43_v8  ;;  %v46_v13 = vshrl.u32 %v44_v11, 16 }
  0x1c   :  { %v49_v14 = vmul.u32 2246822507, %v47_v12  ;;  %v48_v15 = vxor.u32 %v46_v13, %v44_v11 }
  0x1e   :  { %v51_v16 = vshrl.u32 %v49_v14, 13  ;;  %v50_v17 = vmul.u32 2246822507, %v48_v15 }
  0x20   :  { %v53_v18 = vxor.u32 %v51_v16, %v49_v14  ;;  %v52_v19 = vshrl.u32 %v50_v17, 13 }
  0x22   :  { %v55_v20 = vmul.u32 3266489909, %v53_v18  ;;  %v54_v21 = vxor.u32 %v52_v19, %v50_v17 }
  0x24   :  { %v57_v22 = vshrl.u32 %v55_v20, 16  ;;  %v56_v23 = vmul.u32 3266489909, %v54_v21 }
  0x26   :  { %v59_v24 = vxor.u32 %v57_v22, %v55_v20  ;;  %v58_v26 = vshrl.u32 %v56_v23, 16 }
  0x28   :  { %vm61_vm0 = vcmp.gt.u32.totalorder %v59_v24, 644245094  ;;  %v60_v27 = vxor.u32 %v58_v26, %v56_v23 }
  0x29   :  { %v65_v29 = vsel %vm61_vm0, %v63_v25, 0.0 }
  0x2a   :  { %67 = vst [vmem:[#allocation6] sm:$0xff] %v65_v29  ;;  %vm62_vm1 = vcmp.gt.u32.totalorder %v60_v27, 644245094 }
  0x2b   :  { %v66_v30 = vsel %vm62_vm1, %v64_v28, 0.0 }
  0x2c   :  { %68 = vst [vmem:[#allocation6 + $0x8] sm:$0xff] %v66_v30 }
  0x2d   :  { %121 = shalt.err (!%p118_p9)
}
  0x2e   :  { %80 = dma.vmem_to_hbm [thread:$0]  %s75_s1, 256, %s170_s2, [#allocation5], %s135_s12, %s135_s12, %s136_s13  }
  0x2f   :  { %132 = dma.done.wait [#allocation5], 256  }
  0x30   :  { %133 = vsyncadd [#allocation5], 4294967040 }
  0x31   :  { %84 = vsyncpa [#allocation4], 1 }
  0x32   :  { %85 = vsyncpa [#allocation5], 1 }

</bundles_post_ra>
